<compile_context>
chip_gen: v7x
topology: tpu7x:2x2x1
jax: 0.10.0
libtpu: 0.0.40
codegen_flags: <defaults>
</compile_context>

<pallas_src>
import functools

import jax
import jax.numpy as jnp
from jax.experimental import pallas as pl
from jax.experimental.pallas import tpu as pltpu


def _make_qnet_kernel(d_in: int, num_hidden: int):
    w1_off = 0
    b1_off = d_in * num_hidden
    w2_off = b1_off + num_hidden
    b2_off = w2_off + num_hidden

    def kernel(p_ref, x_ref, o_ref):
        # p_ref : SMEM f32[d_in*H + H + H + 1]  (packed W1 | b1 | W2 | b2)
        # x_ref : VMEM f32[d_in, TB]            (batch on lanes)
        # o_ref : VMEM f32[1, TB]               (lane-dense output)
        out_shape = o_ref.shape

        # Load each input-feature row once: [1, TB] vectors.
        rows = [x_ref[pl.ds(i, 1), :] for i in range(d_in)]

        # Start from (b2 + 30): the constant is folded into one scalar add.
        y = jnp.full(out_shape, p_ref[b2_off] + 30.0, dtype=jnp.float32)

        # Layer 1 (VPU scalar-broadcast FMAs) + ReLU, then the N=1 second
        # layer becomes a weighted accumulation of the hidden rows.
        for j in range(num_hidden):
            hj = jnp.full(out_shape, p_ref[b1_off + j], dtype=jnp.float32)
            for i in range(d_in):
                hj = hj + p_ref[w1_off + i * num_hidden + j] * rows[i]
            hj = jnp.maximum(hj, 0.0)
            y = y + p_ref[w2_off + j] * hj

        o_ref[...] = y.astype(o_ref.dtype)

    return kernel


@functools.partial(jax.jit, static_argnames=("batch_tile",))
def shallow_qnetwork_forward(x, w1, b1, w2, b2, *, batch_tile=512):
    """x: [B, D_in] float32; returns [B, 1] float32 (matches nn.Linear(.,1))."""
    B, d_in = x.shape
    num_hidden = w1.shape[1]

    # Pack all parameters into one flat f32 slab (single SMEM-resident input).
    params = jnp.concatenate([
        w1.astype(jnp.float32).reshape(-1),
        b1.astype(jnp.float32).reshape(-1),
        w2.astype(jnp.float32).reshape(-1),
        b2.astype(jnp.float32).reshape(-1),
    ])

    # Lane-dense batch tile (multiple of 128), capped at `batch_tile`.
    tb = min(batch_tile, 128 * pl.cdiv(B, 128))
    b_pad = tb * pl.cdiv(B, tb)

    # Transposed, zero-padded input: [d_in, b_pad], batch on the lane axis.
    x_t = jnp.zeros((d_in, b_pad), jnp.float32).at[:, :B].set(
        x.astype(jnp.float32).T)

    y_t = pl.pallas_call(
        _make_qnet_kernel(d_in, num_hidden),
        out_shape=jax.ShapeDtypeStruct((1, b_pad), jnp.float32),
        grid_spec=pltpu.PrefetchScalarGridSpec(
            num_scalar_prefetch=0,
            grid=(b_pad // tb,),
            in_specs=[
                pl.BlockSpec(memory_space=pltpu.MemorySpace.SMEM),  # params
                pl.BlockSpec((d_in, tb), lambda t: (0, t)),         # x_T tile
            ],
            out_specs=pl.BlockSpec((1, tb), lambda t: (0, t)),      # lane-dense out
        ),
        compiler_params=pltpu.CompilerParams(
            dimension_semantics=("parallel",),
        ),
    )(params, x_t)

    # Back to the PyTorch module's [B, 1] output shape.
    return y_t[0, :B].reshape(B, 1)


def init_params(key, d_in, num_hidden):
    """Deterministic init mimicking nn.Linear default (uniform +-1/sqrt(fan_in))."""
    k1, k2, k3, k4 = jax.random.split(key, 4)
    bound1 = 1.0 / jnp.sqrt(d_in)
    w1 = jax.random.uniform(k1, (d_in, num_hidden), jnp.float32, -bound1, bound1)
    b1 = jax.random.uniform(k2, (1, num_hidden), jnp.float32, -bound1, bound1)
    bound2 = 1.0 / jnp.sqrt(num_hidden)
    w2 = jax.random.uniform(k3, (num_hidden, 1), jnp.float32, -bound2, bound2)
    b2 = jax.random.uniform(k4, (1, 1), jnp.float32, -bound2, bound2)
    return w1, b1, w2, b2


def make_onehot_inputs(key, batch, num_category_contents):
    """Inputs shaped like the module expects: concatenated one-hots per category."""
    cols = []
    keys = jax.random.split(key, len(num_category_contents))
    for k, n in zip(keys, num_category_contents):
        idx = jax.random.randint(k, (batch,), 0, n)
        cols.append(jax.nn.one_hot(idx, n, dtype=jnp.float32))
    return jnp.concatenate(cols, axis=-1)


if __name__ == "__main__":
    # Module config: num_categories=3, num_category_contents=[4, 3, 2], num_hidden=4
    num_category_contents = [4, 3, 2]
    d_in = sum(num_category_contents)   # 9
    num_hidden = 4
    batch = 8

    key = jax.random.PRNGKey(0)
    kx, kp = jax.random.split(key)

    x = make_onehot_inputs(kx, batch, num_category_contents)   # [8, 9]
    w1, b1, w2, b2 = init_params(kp, d_in, num_hidden)

    out = jax.block_until_ready(shallow_qnetwork_forward(x, w1, b1, w2, b2))
    ref = jnp.maximum(x @ w1 + b1, 0.0) @ w2 + b2 + 30.0
    assert out.shape == (batch, 1)
    assert jnp.allclose(out, ref, atol=1e-4, rtol=1e-5)

    # Also exercise the multi-tile (gridded, pipelined) path with a larger batch.
    big_batch = 1000
    xb = make_onehot_inputs(jax.random.PRNGKey(1), big_batch, num_category_contents)
    out_b = jax.block_until_ready(shallow_qnetwork_forward(xb, w1, b1, w2, b2))
    ref_b = jnp.maximum(xb @ w1 + b1, 0.0) @ w2 + b2 + 30.0
    assert out_b.shape == (big_batch, 1)
    assert jnp.allclose(out_b, ref_b, atol=1e-4, rtol=1e-5)

    print("KERNEL_OK")
</pallas_src>

<mosaic_0001>
module attributes {stable_mosaic.version = 11 : i64} {
  func.func @kernel(%arg0: i32, %arg1: memref<45xf32, #tpu.memory_space<smem>>, %arg2: memref<9x128xf32, #tpu.memory_space<vmem>>, %arg3: memref<1x128xf32, #tpu.memory_space<vmem>>) attributes {dimension_semantics = [#tpu.dimension_semantics<parallel>], iteration_bounds = array<i64: 1>, scalar_prefetch = 0 : i64, scratch_operands = 0 : i64, tpu.core_type = #tpu.core_type<tc>, window_params = [{transform_indices = @transform_0, window_bounds = array<i64: 45>}, {transform_indices = @transform_1, window_bounds = array<i64: 9, 128>}, {transform_indices = @transform_2, window_bounds = array<i64: 1, 128>}]} {
    %c0 = arith.constant 0 : index
    %c0_0 = arith.constant 0 : index
    %0 = vector.load %arg2[%c0, %c0_0] : memref<9x128xf32, #tpu.memory_space<vmem>>, vector<1x128xf32>
    %c1 = arith.constant 1 : index
    %c0_1 = arith.constant 0 : index
    %1 = vector.load %arg2[%c1, %c0_1] : memref<9x128xf32, #tpu.memory_space<vmem>>, vector<1x128xf32>
    %c2 = arith.constant 2 : index
    %c0_2 = arith.constant 0 : index
    %2 = vector.load %arg2[%c2, %c0_2] : memref<9x128xf32, #tpu.memory_space<vmem>>, vector<1x128xf32>
    %c3 = arith.constant 3 : index
    %c0_3 = arith.constant 0 : index
    %3 = vector.load %arg2[%c3, %c0_3] : memref<9x128xf32, #tpu.memory_space<vmem>>, vector<1x128xf32>
    %c4 = arith.constant 4 : index
    %c0_4 = arith.constant 0 : index
    %4 = vector.load %arg2[%c4, %c0_4] : memref<9x128xf32, #tpu.memory_space<vmem>>, vector<1x128xf32>
    %c5 = arith.constant 5 : index
    %c0_5 = arith.constant 0 : index
    %5 = vector.load %arg2[%c5, %c0_5] : memref<9x128xf32, #tpu.memory_space<vmem>>, vector<1x128xf32>
    %c6 = arith.constant 6 : index
    %c0_6 = arith.constant 0 : index
    %6 = vector.load %arg2[%c6, %c0_6] : memref<9x128xf32, #tpu.memory_space<vmem>>, vector<1x128xf32>
    %c7 = arith.constant 7 : index
    %c0_7 = arith.constant 0 : index
    %7 = vector.load %arg2[%c7, %c0_7] : memref<9x128xf32, #tpu.memory_space<vmem>>, vector<1x128xf32>
    %c8 = arith.constant 8 : index
    %c0_8 = arith.constant 0 : index
    %8 = vector.load %arg2[%c8, %c0_8] : memref<9x128xf32, #tpu.memory_space<vmem>>, vector<1x128xf32>
    %c44 = arith.constant 44 : index
    %9 = memref.load %arg1[%c44] : memref<45xf32, #tpu.memory_space<smem>>
    %cst = arith.constant 3.000000e+01 : f32
    %10 = arith.addf %9, %cst : f32
    %11 = vector.broadcast %10 : f32 to vector<1x128xf32>
    %c36 = arith.constant 36 : index
    %12 = memref.load %arg1[%c36] : memref<45xf32, #tpu.memory_space<smem>>
    %13 = vector.broadcast %12 : f32 to vector<1x128xf32>
    %c0_9 = arith.constant 0 : index
    %14 = memref.load %arg1[%c0_9] : memref<45xf32, #tpu.memory_space<smem>>
    %15 = vector.broadcast %14 : f32 to vector<1x128xf32>
    %16 = arith.mulf %15, %0 : vector<1x128xf32>
    %17 = arith.addf %13, %16 : vector<1x128xf32>
    %c4_10 = arith.constant 4 : index
    %18 = memref.load %arg1[%c4_10] : memref<45xf32, #tpu.memory_space<smem>>
    %19 = vector.broadcast %18 : f32 to vector<1x128xf32>
    %20 = arith.mulf %19, %1 : vector<1x128xf32>
    %21 = arith.addf %17, %20 : vector<1x128xf32>
    %c8_11 = arith.constant 8 : index
    %22 = memref.load %arg1[%c8_11] : memref<45xf32, #tpu.memory_space<smem>>
    %23 = vector.broadcast %22 : f32 to vector<1x128xf32>
    %24 = arith.mulf %23, %2 : vector<1x128xf32>
    %25 = arith.addf %21, %24 : vector<1x128xf32>
    %c12 = arith.constant 12 : index
    %26 = memref.load %arg1[%c12] : memref<45xf32, #tpu.memory_space<smem>>
    %27 = vector.broadcast %26 : f32 to vector<1x128xf32>
    %28 = arith.mulf %27, %3 : vector<1x128xf32>
    %29 = arith.addf %25, %28 : vector<1x128xf32>
    %c16 = arith.constant 16 : index
    %30 = memref.load %arg1[%c16] : memref<45xf32, #tpu.memory_space<smem>>
    %31 = vector.broadcast %30 : f32 to vector<1x128xf32>
    %32 = arith.mulf %31, %4 : vector<1x128xf32>
    %33 = arith.addf %29, %32 : vector<1x128xf32>
    %c20 = arith.constant 20 : index
    %34 = memref.load %arg1[%c20] : memref<45xf32, #tpu.memory_space<smem>>
    %35 = vector.broadcast %34 : f32 to vector<1x128xf32>
    %36 = arith.mulf %35, %5 : vector<1x128xf32>
    %37 = arith.addf %33, %36 : vector<1x128xf32>
    %c24 = arith.constant 24 : index
    %38 = memref.load %arg1[%c24] : memref<45xf32, #tpu.memory_space<smem>>
    %39 = vector.broadcast %38 : f32 to vector<1x128xf32>
    %40 = arith.mulf %39, %6 : vector<1x128xf32>
    %41 = arith.addf %37, %40 : vector<1x128xf32>
    %c28 = arith.constant 28 : index
    %42 = memref.load %arg1[%c28] : memref<45xf32, #tpu.memory_space<smem>>
    %43 = vector.broadcast %42 : f32 to vector<1x128xf32>
    %44 = arith.mulf %43, %7 : vector<1x128xf32>
    %45 = arith.addf %41, %44 : vector<1x128xf32>
    %c32 = arith.constant 32 : index
    %46 = memref.load %arg1[%c32] : memref<45xf32, #tpu.memory_space<smem>>
    %47 = vector.broadcast %46 : f32 to vector<1x128xf32>
    %48 = arith.mulf %47, %8 : vector<1x128xf32>
    %49 = arith.addf %45, %48 : vector<1x128xf32>
    %cst_12 = arith.constant 0.000000e+00 : f32
    %50 = vector.broadcast %cst_12 : f32 to vector<1x128xf32>
    %51 = arith.maximumf %49, %50 : vector<1x128xf32>
    %c40 = arith.constant 40 : index
    %52 = memref.load %arg1[%c40] : memref<45xf32, #tpu.memory_space<smem>>
    %53 = vector.broadcast %52 : f32 to vector<1x128xf32>
    %54 = arith.mulf %53, %51 : vector<1x128xf32>
    %55 = arith.addf %11, %54 : vector<1x128xf32>
    %c37 = arith.constant 37 : index
    %56 = memref.load %arg1[%c37] : memref<45xf32, #tpu.memory_space<smem>>
    %57 = vector.broadcast %56 : f32 to vector<1x128xf32>
    %c1_13 = arith.constant 1 : index
    %58 = memref.load %arg1[%c1_13] : memref<45xf32, #tpu.memory_space<smem>>
    %59 = vector.broadcast %58 : f32 to vector<1x128xf32>
    %60 = arith.mulf %59, %0 : vector<1x128xf32>
    %61 = arith.addf %57, %60 : vector<1x128xf32>
    %c5_14 = arith.constant 5 : index
    %62 = memref.load %arg1[%c5_14] : memref<45xf32, #tpu.memory_space<smem>>
    %63 = vector.broadcast %62 : f32 to vector<1x128xf32>
    %64 = arith.mulf %63, %1 : vector<1x128xf32>
    %65 = arith.addf %61, %64 : vector<1x128xf32>
    %c9 = arith.constant 9 : index
    %66 = memref.load %arg1[%c9] : memref<45xf32, #tpu.memory_space<smem>>
    %67 = vector.broadcast %66 : f32 to vector<1x128xf32>
    %68 = arith.mulf %67, %2 : vector<1x128xf32>
    %69 = arith.addf %65, %68 : vector<1x128xf32>
    %c13 = arith.constant 13 : index
    %70 = memref.load %arg1[%c13] : memref<45xf32, #tpu.memory_space<smem>>
    %71 = vector.broadcast %70 : f32 to vector<1x128xf32>
    %72 = arith.mulf %71, %3 : vector<1x128xf32>
    %73 = arith.addf %69, %72 : vector<1x128xf32>
    %c17 = arith.constant 17 : index
    %74 = memref.load %arg1[%c17] : memref<45xf32, #tpu.memory_space<smem>>
    %75 = vector.broadcast %74 : f32 to vector<1x128xf32>
    %76 = arith.mulf %75, %4 : vector<1x128xf32>
    %77 = arith.addf %73, %76 : vector<1x128xf32>
    %c21 = arith.constant 21 : index
    %78 = memref.load %arg1[%c21] : memref<45xf32, #tpu.memory_space<smem>>
    %79 = vector.broadcast %78 : f32 to vector<1x128xf32>
    %80 = arith.mulf %79, %5 : vector<1x128xf32>
    %81 = arith.addf %77, %80 : vector<1x128xf32>
    %c25 = arith.constant 25 : index
    %82 = memref.load %arg1[%c25] : memref<45xf32, #tpu.memory_space<smem>>
    %83 = vector.broadcast %82 : f32 to vector<1x128xf32>
    %84 = arith.mulf %83, %6 : vector<1x128xf32>
    %85 = arith.addf %81, %84 : vector<1x128xf32>
    %c29 = arith.constant 29 : index
    %86 = memref.load %arg1[%c29] : memref<45xf32, #tpu.memory_space<smem>>
    %87 = vector.broadcast %86 : f32 to vector<1x128xf32>
    %88 = arith.mulf %87, %7 : vector<1x128xf32>
    %89 = arith.addf %85, %88 : vector<1x128xf32>
    %c33 = arith.constant 33 : index
    %90 = memref.load %arg1[%c33] : memref<45xf32, #tpu.memory_space<smem>>
    %91 = vector.broadcast %90 : f32 to vector<1x128xf32>
    %92 = arith.mulf %91, %8 : vector<1x128xf32>
    %93 = arith.addf %89, %92 : vector<1x128xf32>
    %cst_15 = arith.constant 0.000000e+00 : f32
    %94 = vector.broadcast %cst_15 : f32 to vector<1x128xf32>
    %95 = arith.maximumf %93, %94 : vector<1x128xf32>
    %c41 = arith.constant 41 : index
    %96 = memref.load %arg1[%c41] : memref<45xf32, #tpu.memory_space<smem>>
    %97 = vector.broadcast %96 : f32 to vector<1x128xf32>
    %98 = arith.mulf %97, %95 : vector<1x128xf32>
    %99 = arith.addf %55, %98 : vector<1x128xf32>
    %c38 = arith.constant 38 : index
    %100 = memref.load %arg1[%c38] : memref<45xf32, #tpu.memory_space<smem>>
    %101 = vector.broadcast %100 : f32 to vector<1x128xf32>
    %c2_16 = arith.constant 2 : index
    %102 = memref.load %arg1[%c2_16] : memref<45xf32, #tpu.memory_space<smem>>
    %103 = vector.broadcast %102 : f32 to vector<1x128xf32>
    %104 = arith.mulf %103, %0 : vector<1x128xf32>
    %105 = arith.addf %101, %104 : vector<1x128xf32>
    %c6_17 = arith.constant 6 : index
    %106 = memref.load %arg1[%c6_17] : memref<45xf32, #tpu.memory_space<smem>>
    %107 = vector.broadcast %106 : f32 to vector<1x128xf32>
    %108 = arith.mulf %107, %1 : vector<1x128xf32>
    %109 = arith.addf %105, %108 : vector<1x128xf32>
    %c10 = arith.constant 10 : index
    %110 = memref.load %arg1[%c10] : memref<45xf32, #tpu.memory_space<smem>>
    %111 = vector.broadcast %110 : f32 to vector<1x128xf32>
    %112 = arith.mulf %111, %2 : vector<1x128xf32>
    %113 = arith.addf %109, %112 : vector<1x128xf32>
    %c14 = arith.constant 14 : index
    %114 = memref.load %arg1[%c14] : memref<45xf32, #tpu.memory_space<smem>>
    %115 = vector.broadcast %114 : f32 to vector<1x128xf32>
    %116 = arith.mulf %115, %3 : vector<1x128xf32>
    %117 = arith.addf %113, %116 : vector<1x128xf32>
    %c18 = arith.constant 18 : index
    %118 = memref.load %arg1[%c18] : memref<45xf32, #tpu.memory_space<smem>>
    %119 = vector.broadcast %118 : f32 to vector<1x128xf32>
    %120 = arith.mulf %119, %4 : vector<1x128xf32>
    %121 = arith.addf %117, %120 : vector<1x128xf32>
    %c22 = arith.constant 22 : index
    %122 = memref.load %arg1[%c22] : memref<45xf32, #tpu.memory_space<smem>>
    %123 = vector.broadcast %122 : f32 to vector<1x128xf32>
    %124 = arith.mulf %123, %5 : vector<1x128xf32>
    %125 = arith.addf %121, %124 : vector<1x128xf32>
    %c26 = arith.constant 26 : index
    %126 = memref.load %arg1[%c26] : memref<45xf32, #tpu.memory_space<smem>>
    %127 = vector.broadcast %126 : f32 to vector<1x128xf32>
    %128 = arith.mulf %127, %6 : vector<1x128xf32>
    %129 = arith.addf %125, %128 : vector<1x128xf32>
    %c30 = arith.constant 30 : index
    %130 = memref.load %arg1[%c30] : memref<45xf32, #tpu.memory_space<smem>>
    %131 = vector.broadcast %130 : f32 to vector<1x128xf32>
    %132 = arith.mulf %131, %7 : vector<1x128xf32>
    %133 = arith.addf %129, %132 : vector<1x128xf32>
    %c34 = arith.constant 34 : index
    %134 = memref.load %arg1[%c34] : memref<45xf32, #tpu.memory_space<smem>>
    %135 = vector.broadcast %134 : f32 to vector<1x128xf32>
    %136 = arith.mulf %135, %8 : vector<1x128xf32>
    %137 = arith.addf %133, %136 : vector<1x128xf32>
    %cst_18 = arith.constant 0.000000e+00 : f32
    %138 = vector.broadcast %cst_18 : f32 to vector<1x128xf32>
    %139 = arith.maximumf %137, %138 : vector<1x128xf32>
    %c42 = arith.constant 42 : index
    %140 = memref.load %arg1[%c42] : memref<45xf32, #tpu.memory_space<smem>>
    %141 = vector.broadcast %140 : f32 to vector<1x128xf32>
    %142 = arith.mulf %141, %139 : vector<1x128xf32>
    %143 = arith.addf %99, %142 : vector<1x128xf32>
    %c39 = arith.constant 39 : index
    %144 = memref.load %arg1[%c39] : memref<45xf32, #tpu.memory_space<smem>>
    %145 = vector.broadcast %144 : f32 to vector<1x128xf32>
    %c3_19 = arith.constant 3 : index
    %146 = memref.load %arg1[%c3_19] : memref<45xf32, #tpu.memory_space<smem>>
    %147 = vector.broadcast %146 : f32 to vector<1x128xf32>
    %148 = arith.mulf %147, %0 : vector<1x128xf32>
    %149 = arith.addf %145, %148 : vector<1x128xf32>
    %c7_20 = arith.constant 7 : index
    %150 = memref.load %arg1[%c7_20] : memref<45xf32, #tpu.memory_space<smem>>
    %151 = vector.broadcast %150 : f32 to vector<1x128xf32>
    %152 = arith.mulf %151, %1 : vector<1x128xf32>
    %153 = arith.addf %149, %152 : vector<1x128xf32>
    %c11 = arith.constant 11 : index
    %154 = memref.load %arg1[%c11] : memref<45xf32, #tpu.memory_space<smem>>
    %155 = vector.broadcast %154 : f32 to vector<1x128xf32>
    %156 = arith.mulf %155, %2 : vector<1x128xf32>
    %157 = arith.addf %153, %156 : vector<1x128xf32>
    %c15 = arith.constant 15 : index
    %158 = memref.load %arg1[%c15] : memref<45xf32, #tpu.memory_space<smem>>
    %159 = vector.broadcast %158 : f32 to vector<1x128xf32>
    %160 = arith.mulf %159, %3 : vector<1x128xf32>
    %161 = arith.addf %157, %160 : vector<1x128xf32>
    %c19 = arith.constant 19 : index
    %162 = memref.load %arg1[%c19] : memref<45xf32, #tpu.memory_space<smem>>
    %163 = vector.broadcast %162 : f32 to vector<1x128xf32>
    %164 = arith.mulf %163, %4 : vector<1x128xf32>
    %165 = arith.addf %161, %164 : vector<1x128xf32>
    %c23 = arith.constant 23 : index
    %166 = memref.load %arg1[%c23] : memref<45xf32, #tpu.memory_space<smem>>
    %167 = vector.broadcast %166 : f32 to vector<1x128xf32>
    %168 = arith.mulf %167, %5 : vector<1x128xf32>
    %169 = arith.addf %165, %168 : vector<1x128xf32>
    %c27 = arith.constant 27 : index
    %170 = memref.load %arg1[%c27] : memref<45xf32, #tpu.memory_space<smem>>
    %171 = vector.broadcast %170 : f32 to vector<1x128xf32>
    %172 = arith.mulf %171, %6 : vector<1x128xf32>
    %173 = arith.addf %169, %172 : vector<1x128xf32>
    %c31 = arith.constant 31 : index
    %174 = memref.load %arg1[%c31] : memref<45xf32, #tpu.memory_space<smem>>
    %175 = vector.broadcast %174 : f32 to vector<1x128xf32>
    %176 = arith.mulf %175, %7 : vector<1x128xf32>
    %177 = arith.addf %173, %176 : vector<1x128xf32>
    %c35 = arith.constant 35 : index
    %178 = memref.load %arg1[%c35] : memref<45xf32, #tpu.memory_space<smem>>
    %179 = vector.broadcast %178 : f32 to vector<1x128xf32>
    %180 = arith.mulf %179, %8 : vector<1x128xf32>
    %181 = arith.addf %177, %180 : vector<1x128xf32>
    %cst_21 = arith.constant 0.000000e+00 : f32
    %182 = vector.broadcast %cst_21 : f32 to vector<1x128xf32>
    %183 = arith.maximumf %181, %182 : vector<1x128xf32>
    %c43 = arith.constant 43 : index
    %184 = memref.load %arg1[%c43] : memref<45xf32, #tpu.memory_space<smem>>
    %185 = vector.broadcast %184 : f32 to vector<1x128xf32>
    %186 = arith.mulf %185, %183 : vector<1x128xf32>
    %187 = arith.addf %143, %186 : vector<1x128xf32>
    %c0_22 = arith.constant 0 : index
    %c0_23 = arith.constant 0 : index
    %188 = vector.load %arg3[%c0_22, %c0_23] : memref<1x128xf32, #tpu.memory_space<vmem>>, vector<1x128xf32>
    tpu.vector_store %arg3[%c0_22, %c0_23], %187 {strides = array<i32>} : memref<1x128xf32, #tpu.memory_space<vmem>>, vector<1x128xf32>,
    return
  }
  func.func @transform_0(%arg0: i32) -> i32 {
    %c0_i32 = arith.constant 0 : i32
    %c0_i32_0 = arith.constant 0 : i32
    return %c0_i32 : i32
  }
  func.func @transform_1(%arg0: i32) -> (i32, i32) {
    %c0_i32 = arith.constant 0 : i32
    %c0_i32_0 = arith.constant 0 : i32
    return %c0_i32, %arg0 : i32, i32
  }
  func.func @transform_2(%arg0: i32) -> (i32, i32) {
    %c0_i32 = arith.constant 0 : i32
    %c0_i32_0 = arith.constant 0 : i32
    return %c0_i32, %arg0 : i32, i32
  }
}

</mosaic_0001>

<bundles_post_ra>
// kernel: shallow_qnetwork_forward.1
= control target key start
LH: loop header
LB: loop body
LE: loop exit
PB: predicated region body
PF: predicated region fallthrough
CT: control target
= control target key end

     0   :  { %7 = vsyncpa [#allocation3], 0  ;;  %s493_s0 = inlined_call_operand.vmem [shape: f32[45], index: 0, kind: input, shape index: {}]   ;;  %s494_s1 = inlined_call_operand.vmem [shape: f32[9,128], index: 1, kind: input, shape index: {}]   ;;  %s495_s2 = inlined_call_operand.vmem [shape: f32[1,128], index: 2, kind: output, shape index: {}]  }
   0x1   :  { %s14_s11 = sshll.u32 %s493_s0, 4  ;;  %s15_s11 = int_to_ptr.vmem [resolvable:$true] %s14_s11 }
   0x2   :  { %s259_s12 = scalar_lea.vmem %s15_s11, 16  ;;  %p264_p1 = scmp.lt.s32.totalorder %s15_s11, %s15_s11 }
   0x3   :  { %p260_p0 = scmp.ne.s32.totalorder %s15_s11, %s259_s12  ;;  %p265_p2 = scmp.lt.s32.totalorder %s259_s12, %s259_s12 }
   0x5   :  { %p266_p3 = por %p265_p2, %p264_p1 }
   0x7   :  { %p267_p4 = pnand %p266_p3, %p260_p0 }
   0x9   :  { %270 = shalt.err (!%p267_p4)
}
   0xa   :  { %s273_s13 = smov [#allocation2]  }
   0xb   :  { %17 = dma.vmem_to_smem %s15_s11, 16, %s273_s13, [#allocation3]  }
   0xc   :  { %271 = dma.done.wait [#allocation3], 16  }
   0xd   :  { %272 = vsyncadd [#allocation3], 4294967280 }
   0xe   :  { %23 = sfence }
   0xf   :  { %s215_s14 = sld [smem:[#allocation2 + $0x24]]  ;;  %s38_s15 = sld [smem:[#allocation2]]  ;;  %v303_v0 = vld [vmem:[%s494_s1] sm:$0x1]  ;;  %v308_v1 = vld [vmem:[%s494_s1 + $0x1] sm:$0x1] }
  0x10   :  { %s216_s16 = sld [smem:[#allocation2 + $0x4]]  ;;  %s217_s17 = sld [smem:[#allocation2 + $0x8]]  ;;  %v319_v2 = vld [vmem:[%s494_s1 + $0x2] sm:$0x1]  ;;  %v328_v6 = vld [vmem:[%s494_s1 + $0x3] sm:$0x1] }
  0x11   :  { %s292_s18 = sld [smem:[#allocation2 + $0xc]]  ;;  %s294_s0 = sld [smem:[#allocation2 + $0x10]]  ;;  %v339_v10 = vld [vmem:[%s494_s1 + $0x4] sm:$0x1]  ;;  %v353_v15 = vld [vmem:[%s494_s1 + $0x5] sm:$0x1] }
  0x12   :  { %s296_s19 = sld [smem:[#allocation2 + $0x14]]  ;;  %s298_s20 = sld [smem:[#allocation2 + $0x18]]  ;;  %v363_v17 = vld [vmem:[%s494_s1 + $0x6] sm:$0x1]  ;;  %v383_v26 = vld [vmem:[%s494_s1 + $0x7] sm:$0x1] }
  0x13   :  { %s310_s25 = sld [smem:[#allocation2 + $0x1c]]  ;;  %s312_s26 = sld [smem:[#allocation2 + $0x20]]  ;;  %v423_v51 = vld [vmem:[%s494_s1 + $0x8] sm:$0x1] }
  0x14   :  { %s314_s27 = sld [smem:[#allocation2 + $0x25]]  ;;  %s321_s30 = sld [smem:[#allocation2 + $0x1]] }
  0x15   :  { %v37_v3 = vstv %s215_s14  ;;  %v39_v4 = vstv %s38_s15  ;;  %s323_s3 = sld [smem:[#allocation2 + $0x5]]  ;;  %s332_s6 = sld [smem:[#allocation2 + $0x9]] }
  0x16   :  { %v43_v5 = vstv %s216_s16  ;;  %v40_v7 = vmul.f32 %v39_v4, %v303_v0  ;;  %v47_v9 = vstv %s217_s17  ;;  %s334_s7 = sld [smem:[#allocation2 + $0xd]]  ;;  %s343_s10 = sld [smem:[#allocation2 + $0x11]] }
  0x17   :  { %v44_v8 = vmul.f32 %v43_v5, %v308_v1  ;;  %v51_v11 = vstv %s292_s18  ;;  %v55_v12 = vstv %s294_s0  ;;  %s345_s11 = sld [smem:[#allocation2 + $0x15]]  ;;  %v48_v14 = vmul.f32 %v47_v9, %v319_v2  ;;  %s348_s12 = sld [smem:[#allocation2 + $0x19]] }
  0x18   :  { %v41_v13 = vadd.f32 %v40_v7, %v37_v3  ;;  %v59_v16 = vstv %s296_s19  ;;  %s356_s15 = sld [smem:[#allocation2 + $0x1d]]  ;;  %s358_s16 = sld [smem:[#allocation2 + $0x21]]  ;;  %v52_v19 = vmul.f32 %v51_v11, %v328_v6  ;;  %v56_v20 = vmul.f32 %v55_v12, %v339_v10 }
  0x19   :  { %v63_v21 = vstv %s298_s20  ;;  %s368_s0 = sld [smem:[#allocation2 + $0x26]]  ;;  %s370_s19 = sld [smem:[#allocation2 + $0x2]]  ;;  %v67_v22 = vstv %s310_s25  ;;  %v60_v31 = vmul.f32 %v59_v16, %v353_v15  ;;  %v71_v36 = vstv %s312_s26 }
  0x1a   :  { %v45_v18 = vadd.f32 %v44_v8, %v41_v13  ;;  %v80_v23 = vstv %s314_s27  ;;  %v82_v24 = vstv %s321_s30  ;;  %s376_s21 = sld [smem:[#allocation2 + $0x6]]  ;;  %s378_s22 = sld [smem:[#allocation2 + $0xa]]  ;;  %v64_v39 = vmul.f32 %v63_v21, %v363_v17 }
  0x1b   :  { %v86_v25 = vstv %s323_s3  ;;  %v83_v28 = vmul.f32 %v82_v24, %v303_v0  ;;  %v90_v30 = vstv %s332_s6  ;;  %s388_s20 = sld [smem:[#allocation2 + $0xe]]  ;;  %s390_s25 = sld [smem:[#allocation2 + $0x12]]  ;;  %v68_v40 = vmul.f32 %v67_v22, %v383_v26 }
  0x1c   :  { %v49_v27 = vadd.f32 %v48_v14, %v45_v18  ;;  %v87_v29 = vmul.f32 %v86_v25, %v308_v1  ;;  %v94_v32 = vstv %s334_s7  ;;  %v98_v33 = vstv %s343_s10  ;;  %s396_s27 = sld [smem:[#allocation2 + $0x16]]  ;;  %s402_s28 = sld [smem:[#allocation2 + $0x28]] }
  0x1d   :  { %v102_v34 = vstv %s345_s11  ;;  %v84_v37 = vadd.f32 %v83_v28, %v80_v23  ;;  %v91_v38 = vmul.f32 %v90_v30, %v319_v2  ;;  %v95_v41 = vmul.f32 %v94_v32, %v328_v6  ;;  %s408_s26 = sld [smem:[#allocation2 + $0x1a]]  ;;  %s410_s29 = sld [smem:[#allocation2 + $0x27]] }
  0x1e   :  { %v53_v35 = vadd.f32 %v52_v19, %v49_v27  ;;  %v99_v42 = vmul.f32 %v98_v33, %v339_v10  ;;  %v103_v45 = vmul.f32 %v102_v34, %v353_v15  ;;  %v106_v46 = vstv %s348_s12  ;;  %s416_s30 = sld [smem:[#allocation2 + $0x3]]  ;;  %s418_s3 = sld [smem:[#allocation2 + $0x7]] }
  0x1f   :  { %v88_v44 = vadd.f32 %v87_v29, %v84_v37  ;;  %v110_v47 = vstv %s356_s15  ;;  %v114_v48 = vstv %s358_s16  ;;  %v123_v49 = vstv %s368_s0  ;;  %s427_s6 = sld [smem:[#allocation2 + $0x1e]]  ;;  %s433_s7 = sld [smem:[#allocation2 + $0xb]] }
  0x20   :  { %v57_v43 = vadd.f32 %v56_v20, %v53_v35  ;;  %v125_v50 = vstv %s370_s19  ;;  %v129_v55 = vstv %s376_s21  ;;  %v133_v57 = vstv %s378_s22  ;;  %s435_s8 = sld [smem:[#allocation2 + $0xf]]  ;;  %s438_s1 = sld [smem:[#allocation2 + $0x22]] }
  0x21   :  { %v92_v53 = vadd.f32 %v91_v38, %v88_v44  ;;  %v126_v54 = vmul.f32 %v125_v50, %v303_v0  ;;  %v130_v56 = vmul.f32 %v129_v55, %v308_v1  ;;  %v137_v58 = vstv %s388_s20  ;;  %s440_s9 = sld [smem:[#allocation2 + $0x2c]]  ;;  %s445_s10 = sld [smem:[#allocation2 + $0x13]] }
  0x22   :  { %v61_v52 = vadd.f32 %v60_v31, %v57_v43  ;;  %v141_v59 = vstv %s390_s25  ;;  %v134_v63 = vmul.f32 %v133_v57, %v319_v2  ;;  %v72_v3 = vmul.f32 %v71_v36, %v423_v51  ;;  %s452_s11 = sld [smem:[#allocation2 + $0x17]]  ;;  %s459_s12 = sld [smem:[#allocation2 + $0x1b]] }
  0x23   :  { %v96_v61 = vadd.f32 %v95_v41, %v92_v53  ;;  %v127_v62 = vadd.f32 %v126_v54, %v123_v49  ;;  %v107_v4 = vmul.f32 %v106_v46, %v363_v17  ;;  %v145_v5 = vstv %s396_s27  ;;  %s463_s13 = sld [smem:[#allocation2 + $0x29]]  ;;  %s469_s14 = sld [smem:[#allocation2 + $0x1f]] }
  0x24   :  { %v65_v60 = vadd.f32 %v64_v39, %v61_v52  ;;  %v138_v11 = vmul.f32 %v137_v58, %v328_v6  ;;  %v76_v12 = vstv %s402_s28  ;;  %v111_v13 = vmul.f32 %v110_v47, %v383_v26  ;;  %s476_s16 = sld [smem:[#allocation2 + $0x23]]  ;;  %s246_s17 = sld [smem:[#allocation2 + $0x2a]] }
  0x25   :  { %v100_v8 = vadd.f32 %v99_v42, %v96_v61  ;;  %v131_v9 = vadd.f32 %v130_v56, %v127_v62  ;;  %v115_v14 = vmul.f32 %v114_v48, %v423_v51  ;;  %v142_v16 = vmul.f32 %v141_v59, %v339_v10  ;;  %s257_s18 = sld [smem:[#allocation2 + $0x2b]] }
  0x26   :  { %v69_v7 = vadd.f32 %v68_v40, %v65_v60  ;;  %v146_v20 = vmul.f32 %v145_v5, %v353_v15  ;;  %v149_v21 = vstv %s408_s26  ;;  %v166_v23 = vstv %s410_s29 }
  0x27   :  { %v104_v18 = vadd.f32 %v103_v45, %v100_v8  ;;  %v135_v19 = vadd.f32 %v134_v63, %v131_v9  ;;  %v168_v24 = vstv %s416_s30  ;;  %v172_v25 = vstv %s418_s3  ;;  %s34_s15 = sadd.f32 30.0, %s440_s9 }
  0x28   :  { %v73_v22 = vadd.f32 %v72_v3, %v69_v7  ;;  %v153_v29 = vstv %s427_s6  ;;  %v169_v30 = vmul.f32 %v168_v24, %v303_v0  ;;  %v150_v31 = vmul.f32 %v149_v21, %v363_v17 }
  0x29   :  { %v108_v27 = vadd.f32 %v107_v4, %v104_v18  ;;  %v139_v28 = vadd.f32 %v138_v11, %v135_v19  ;;  %v173_v32 = vmul.f32 %v172_v25, %v308_v1  ;;  %v176_v33 = vstv %s433_s7 }
  0x2a   :  { %v180_v34 = vstv %s435_s8  ;;  %v157_v37 = vstv %s438_s1  ;;  %v170_v38 = vadd.f32 %v169_v30, %v166_v23  ;;  %v74_v39 = vmax.f32 %v73_v22, 0.0 }
  0x2b   :  { %v112_v35 = vadd.f32 %v111_v13, %v108_v27  ;;  %v143_v36 = vadd.f32 %v142_v16, %v139_v28  ;;  %v154_v40 = vmul.f32 %v153_v29, %v383_v26  ;;  %v177_v0 = vmul.f32 %v176_v33, %v319_v2 }
  0x2c   :  { %v184_v41 = vstv %s445_s10  ;;  %v174_v43 = vadd.f32 %v173_v32, %v170_v38  ;;  %v181_v44 = vmul.f32 %v180_v34, %v328_v6  ;;  %v188_v45 = vstv %s452_s11 }
  0x2d   :  { %v116_v1 = vadd.f32 %v115_v14, %v112_v35  ;;  %v147_v42 = vadd.f32 %v146_v20, %v143_v36  ;;  %v158_v47 = vmul.f32 %v157_v37, %v423_v51  ;;  %v185_v49 = vmul.f32 %v184_v41, %v339_v10 }
  0x2e   :  { %v178_v48 = vadd.f32 %v177_v0, %v174_v43  ;;  %v35_v2 = vstv %s34_s15  ;;  %v77_v50 = vmul.f32 %v76_v12, %v74_v39  ;;  %v192_v52 = vstv %s459_s12 }
  0x2f   :  { %v151_v46 = vadd.f32 %v150_v31, %v147_v42  ;;  %v117_v53 = vmax.f32 %v116_v1, 0.0  ;;  %v189_v56 = vmul.f32 %v188_v45, %v353_v15  ;;  %v119_v57 = vstv %s463_s13 }
  0x30   :  { %v182_v55 = vadd.f32 %v181_v44, %v178_v48  ;;  %v196_v58 = vstv %s469_s14  ;;  %v193_v60 = vmul.f32 %v192_v52, %v363_v17  ;;  %v78_v61 = vadd.f32 %v77_v50, %v35_v2 }
  0x31   :  { %v155_v54 = vadd.f32 %v154_v40, %v151_v46  ;;  %v200_v62 = vstv %s476_s16  ;;  %v120_v63 = vmul.f32 %v119_v57, %v117_v53  ;;  %v197_v4 = vmul.f32 %v196_v58, %v383_v26 }
  0x32   :  { %v186_v59 = vadd.f32 %v185_v49, %v182_v55  ;;  %v162_v5 = vstv %s246_s17  ;;  %v201_v8 = vmul.f32 %v200_v62, %v423_v51  ;;  %v205_v13 = vstv %s257_s18 }
  0x33   :  { %v159_v6 = vadd.f32 %v158_v47, %v155_v54  ;;  %v121_v9 = vadd.f32 %v120_v63, %v78_v61 }
  0x34   :  { %v190_v10 = vadd.f32 %v189_v56, %v186_v59 }
  0x35   :  { %v160_v3 = vmax.f32 %v159_v6, 0.0 }
  0x36   :  { %v194_v7 = vadd.f32 %v193_v60, %v190_v10 }
  0x37   :  { %v163_v15 = vmul.f32 %v162_v5, %v160_v3 }
  0x38   :  { %v198_v11 = vadd.f32 %v197_v4, %v194_v7 }
  0x39   :  { %v164_v14 = vadd.f32 %v163_v15, %v121_v9 }
  0x3a   :  { %v202_v12 = vadd.f32 %v201_v8, %v198_v11 }
  0x3c   :  { %v203_v16 = vmax.f32 %v202_v12, 0.0 }
  0x3e   :  { %v206_v17 = vmul.f32 %v205_v13, %v203_v16 }
  0x40   :  { %v207_v18 = vadd.f32 %v206_v17, %v164_v14 }
  0x42   :  { %208 = vst [vmem:[%s495_s2] sm:$0x1] %v207_v18 }
  0x43   :  { %213 = vsyncpa [#allocation3], 1 }

</bundles_post_ra>
